<compile_context>
chip_gen: v7x
topology: tpu7x:2x2x1
jax: 0.10.0
libtpu: 0.0.40
codegen_flags: <defaults>
</compile_context>

<pallas_src>
import functools
import math

import jax
import jax.numpy as jnp
from jax import lax
from jax.experimental import pallas as pl
from jax.experimental.pallas import tpu as pltpu


def _sublane(dtype):
    """Sublane alignment for a dtype (8 f32, 16 bf16, 32 int8/fp8)."""
    return {4: 8, 2: 16, 1: 32}[jnp.dtype(dtype).itemsize]


def _pick_tile(dim, preferred, align):
    """Largest `align`-multiple tile <= preferred that evenly divides dim."""
    if dim <= preferred:
        return dim
    t = (preferred // align) * align
    while t >= align:
        if dim % t == 0:
            return t
        t -= align
    return dim  # full-dim fallback (see TODO above)


# ----------------------------------------------------------------------------
# Kernel 1: linear projection emitted head-major.
#   x (B,S,D) @ w (D, n_seg*D) + b  ->  out (n_seg, B, H, S, d_k)
#   grid = (B, S//tm, n_groups, D//tk); reduction (k) last; f32 accumulator.
#   The per-head scatter happens once per output tile, at finalize.
# ----------------------------------------------------------------------------
def _proj_heads_kernel(x_ref, w_ref, b_ref, o_ref, acc_ref, *, d_k):
    kk = pl.program_id(3)

    @pl.when(kk == 0)
    def _init():
        acc_ref[...] = jnp.zeros_like(acc_ref)

    acc_ref[...] += jnp.dot(x_ref[0], w_ref[...],
                            preferred_element_type=jnp.float32)

    @pl.when(kk == pl.num_programs(3) - 1)
    def _finalize():
        n_seg_blk = o_ref.shape[0]     # segments covered by this output block
        hb = o_ref.shape[2]            # heads covered by this output block
        for ss in range(n_seg_blk):    # static; amortized over the K loop
            for hh in range(hb):
                col = (ss * hb + hh) * d_k
                o_ref[ss, 0, hh] = (acc_ref[:, col:col + d_k]
                                    + b_ref[ss, hh, 0]).astype(o_ref.dtype)


def project_heads(x, w, b, num_heads, *, tm=256, tk=512, tn_target=512):
    """x: (B,S,D), w: (D, n_seg*D), b: (n_seg,H,1,d_k) -> (n_seg,B,H,S,d_k)."""
    B, S, D = x.shape
    H = num_heads
    d_k = D // H
    n_seg = w.shape[1] // D

    tm = _pick_tile(S, tm, _sublane(x.dtype))
    tk = _pick_tile(D, tk, 128)

    # Heads per N tile: must divide H (a tile never straddles the q/k/v
    # segment boundary) and keep the tile width 128-lane aligned.
    cands = [c for c in range(1, H + 1)
             if H % c == 0 and (c * d_k) % 128 == 0]
    if cands:
        fit = [c for c in cands if c * d_k <= tn_target]
        hb = max(fit) if fit else min(cands)
        hpg = H // hb                          # head-blocks per segment
        n_groups = n_seg * hpg
        tn = hb * d_k
        w_spec = pl.BlockSpec((tk, tn), lambda b_, i, j, k: (k, j))
        b_spec = pl.BlockSpec((1, hb, 1, d_k),
                              lambda b_, i, j, k: (j // hpg, j % hpg, 0, 0))
        o_spec = pl.BlockSpec((1, 1, hb, tm, d_k),
                              lambda b_, i, j, k: (j // hpg, b_, j % hpg, i, 0))
    else:
        # Small / unaligned D (e.g. the unit test): one full-width N tile.
        n_groups = 1
        tn = n_seg * D
        w_spec = pl.BlockSpec((tk, tn), lambda b_, i, j, k: (k, 0))
        b_spec = pl.BlockSpec((n_seg, H, 1, d_k),
                              lambda b_, i, j, k: (0, 0, 0, 0))
        o_spec = pl.BlockSpec((n_seg, 1, H, tm, d_k),
                              lambda b_, i, j, k: (0, b_, 0, i, 0))

    grid = (B, S // tm, n_groups, D // tk)
    kernel = functools.partial(_proj_heads_kernel, d_k=d_k)
    return pl.pallas_call(
        kernel,
        out_shape=jax.ShapeDtypeStruct((n_seg, B, H, S, d_k), x.dtype),
        grid_spec=pltpu.PrefetchScalarGridSpec(
            num_scalar_prefetch=0,
            grid=grid,
            in_specs=[
                pl.BlockSpec((1, tm, tk), lambda b_, i, j, k: (b_, i, k)),
                w_spec,
                b_spec,
            ],
            out_specs=o_spec,
            scratch_shapes=[pltpu.VMEM((tm, tn), jnp.float32)],
        ),
        compiler_params=pltpu.CompilerParams(
            dimension_semantics=("parallel", "parallel", "parallel",
                                 "arbitrary")),
    )(x, w, b)


# ----------------------------------------------------------------------------
# Kernel 2: flash-attention SDPA, one (batch, head, q-tile) per grid point.
#   q/k/v: (G, B, H, S, d_k) head-major; online softmax over the kv axis.
#   No in-kernel head loop, no lane slicing. Scale is pre-folded into wq/bq.
# ----------------------------------------------------------------------------
def _flash_kernel(q_ref, k_ref, v_ref, o_ref, m_ref, l_ref, acc_ref):
    ki = pl.program_id(3)

    @pl.when(ki == 0)
    def _init():
        m_ref[...] = jnp.full_like(m_ref, -jnp.inf)
        l_ref[...] = jnp.zeros_like(l_ref)
        acc_ref[...] = jnp.zeros_like(acc_ref)

    q = q_ref[0, 0, 0]          # (tq,  d_k)
    k = k_ref[0, 0, 0]          # (tkv, d_k)
    v = v_ref[0, 0, 0]          # (tkv, d_k)

    # scores = q @ k^T without materializing a transpose of k.
    s = lax.dot_general(q, k, (((1,), (1,)), ((), ())),
                        preferred_element_type=jnp.float32)      # (tq, tkv)

    m_prev = m_ref[...]
    m_new = jnp.maximum(m_prev, jnp.max(s, axis=-1, keepdims=True))
    alpha = jnp.exp(m_prev - m_new)
    p = jnp.exp(s - m_new)                                       # (tq, tkv)
    l_ref[...] = alpha * l_ref[...] + jnp.sum(p, axis=-1, keepdims=True)
    acc_ref[...] = alpha * acc_ref[...] + jnp.dot(
        p.astype(v.dtype), v, preferred_element_type=jnp.float32)
    m_ref[...] = m_new

    @pl.when(ki == pl.num_programs(3) - 1)
    def _finalize():
        inv_l = pl.reciprocal(l_ref[...])            # exact, EUP slot
        o_ref[0, 0] = (acc_ref[...] * inv_l).astype(o_ref.dtype)


def flash_attention(q, k, v, *, q_seg=0, k_seg=0, v_seg=0, tq=256, tkv=512):
    """q/k/v: (G,B,H,S,d_k) (may be the same array); *_seg picks the slab."""
    _, B, H, Sq, d_k = q.shape
    Skv = k.shape[3]
    sub = _sublane(q.dtype)
    tq = _pick_tile(Sq, tq, sub)
    tkv = _pick_tile(Skv, tkv, sub)
    grid = (B, H, Sq // tq, Skv // tkv)
    return pl.pallas_call(
        _flash_kernel,
        out_shape=jax.ShapeDtypeStruct((B, H, Sq, d_k), q.dtype),
        grid_spec=pltpu.PrefetchScalarGridSpec(
            num_scalar_prefetch=0,
            grid=grid,
            in_specs=[
                pl.BlockSpec((1, 1, 1, tq, d_k),
                             lambda b, h, qi, ki: (q_seg, b, h, qi, 0)),
                pl.BlockSpec((1, 1, 1, tkv, d_k),
                             lambda b, h, qi, ki: (k_seg, b, h, ki, 0)),
                pl.BlockSpec((1, 1, 1, tkv, d_k),
                             lambda b, h, qi, ki: (v_seg, b, h, ki, 0)),
            ],
            out_specs=pl.BlockSpec((1, 1, tq, d_k),
                                   lambda b, h, qi, ki: (b, h, qi, 0)),
            scratch_shapes=[
                pltpu.VMEM((tq, 1), jnp.float32),     # running max
                pltpu.VMEM((tq, 1), jnp.float32),     # running sum
                pltpu.VMEM((tq, d_k), jnp.float32),   # output accumulator
            ],
        ),
        compiler_params=pltpu.CompilerParams(
            dimension_semantics=("parallel", "parallel", "parallel",
                                 "arbitrary")),
    )(q, k, v)


# ----------------------------------------------------------------------------
# Kernel 3: output projection directly from the head-major attention output.
#   out[b,s,:] = sum_h attn[b,h,s,:] @ wo_h[h] + bo ; reduction over heads.
# ----------------------------------------------------------------------------
def _out_proj_kernel(a_ref, w_ref, b_ref, o_ref, acc_ref):
    h = pl.program_id(3)

    @pl.when(h == 0)
    def _init():
        acc_ref[...] = jnp.zeros_like(acc_ref)

    acc_ref[...] += jnp.dot(a_ref[0, 0], w_ref[0],
                            preferred_element_type=jnp.float32)

    @pl.when(h == pl.num_programs(3) - 1)
    def _finalize():
        o_ref[0] = (acc_ref[...] + b_ref[...]).astype(o_ref.dtype)


def output_projection(attn, w_h, b, *, tm=256, tn=512):
    """attn: (B,H,S,d_k), w_h: (H,d_k,D), b: (1,D) -> (B,S,D)."""
    B, H, S, d_k = attn.shape
    D = w_h.shape[2]
    tm = _pick_tile(S, tm, _sublane(attn.dtype))
    tn = _pick_tile(D, tn, 128)
    grid = (B, S // tm, D // tn, H)
    return pl.pallas_call(
        _out_proj_kernel,
        out_shape=jax.ShapeDtypeStruct((B, S, D), attn.dtype),
        grid_spec=pltpu.PrefetchScalarGridSpec(
            num_scalar_prefetch=0,
            grid=grid,
            in_specs=[
                pl.BlockSpec((1, 1, tm, d_k),
                             lambda b_, i, j, h: (b_, h, i, 0)),
                pl.BlockSpec((1, d_k, tn), lambda b_, i, j, h: (h, 0, j)),
                pl.BlockSpec((1, tn), lambda b_, i, j, h: (0, j)),
            ],
            out_specs=pl.BlockSpec((1, tm, tn),
                                   lambda b_, i, j, h: (b_, i, j)),
            scratch_shapes=[pltpu.VMEM((tm, tn), jnp.float32)],
        ),
        compiler_params=pltpu.CompilerParams(
            dimension_semantics=("parallel", "parallel", "parallel",
                                 "arbitrary")),
    )(attn, w_h, b)


# ----------------------------------------------------------------------------
# Parameter prep (once, outside the forward) + forward pass
# ----------------------------------------------------------------------------
def prepare_params(raw, num_heads):
    """Fold 1/sqrt(d_k) into q, pre-concat QKV, re-group wo head-major."""
    D = raw["wq"].shape[0]
    d_k = D // num_heads
    scale = 1.0 / math.sqrt(d_k)
    wq = raw["wq"] * scale
    bq = raw["bq"] * scale

    def head_bias(b, n_seg=1):
        return b.reshape(n_seg, num_heads, 1, d_k)

    return {
        "num_heads": num_heads,
        "d_k": d_k,
        # fused self-attention path
        "w_qkv": jnp.concatenate([wq, raw["wk"], raw["wv"]], axis=1),  # (D,3D)
        "b_qkv": head_bias(jnp.concatenate([bq, raw["bk"], raw["bv"]]), 3),
        # cross-attention path (separate projections)
        "wq": wq, "bq": head_bias(bq),
        "wk": raw["wk"], "bk": head_bias(raw["bk"]),
        "wv": raw["wv"], "bv": head_bias(raw["bv"]),
        # output projection
        "wo_h": raw["wo"].reshape(num_heads, d_k, D),
        "bo": raw["bo"].reshape(1, D),
    }


def multi_headed_attention(params, query, key, value):
    """query/key/value: (B, S, D) -> (B, S, D). Eval mode, mask=None, bias=None."""
    H = params["num_heads"]
    if key is query and value is query:
        # Self-attention: single fused (D,3D) projection, one HBM pass over x.
        qkv = project_heads(query, params["w_qkv"], params["b_qkv"], H)
        attn = flash_attention(qkv, qkv, qkv, q_seg=0, k_seg=1, v_seg=2)
    else:
        # Cross-attention: independent projections, no activation stacking.
        qh = project_heads(query, params["wq"], params["bq"], H)
        kh = project_heads(key, params["wk"], params["bk"], H)
        vh = project_heads(value, params["wv"], params["bv"], H)
        attn = flash_attention(qh, kh, vh)
    return output_projection(attn, params["wo_h"], params["bo"])


# Pure-JAX reference (uses the raw, unscaled parameters).
def _reference(raw, query, key, value, num_heads):
    B, S, D = query.shape
    d_k = D // num_heads

    def project(x, w, b):
        Bx, Sx, _ = x.shape
        y = x.reshape(Bx * Sx, D) @ w + b
        return jnp.transpose(y.reshape(Bx, Sx, num_heads, d_k), (0, 2, 1, 3))

    q = project(query, raw["wq"], raw["bq"])
    k = project(key, raw["wk"], raw["bk"])
    v = project(value, raw["wv"], raw["bv"])
    scores = jnp.einsum("bhqd,bhkd->bhqk", q, k) / math.sqrt(d_k)
    p = jax.nn.softmax(scores, axis=-1)
    x = jnp.einsum("bhqk,bhkd->bhqd", p, v)
    x = jnp.transpose(x, (0, 2, 1, 3)).reshape(B, S, D)
    return x @ raw["wo"] + raw["bo"]


if __name__ == "__main__":
    B, S, D, H = 2, 8, 32, 4   # batch, seq, hidden, heads (d_k = 8)

    key0 = jax.random.PRNGKey(0)
    keys = jax.random.split(key0, 12)
    lim = 1.0 / math.sqrt(D)   # mimic nn.Linear's uniform init

    def init_w(k):
        return jax.random.uniform(k, (D, D), jnp.float32, -lim, lim)

    def init_b(k):
        return jax.random.uniform(k, (D,), jnp.float32, -lim, lim)

    raw = {
        "wq": init_w(keys[0]), "bq": init_b(keys[1]),
        "wk": init_w(keys[2]), "bk": init_b(keys[3]),
        "wv": init_w(keys[4]), "bv": init_b(keys[5]),
        "wo": init_w(keys[6]), "bo": init_b(keys[7]),
    }
    params = prepare_params(raw, H)

    # Self-attention (fused QKV path).
    x = jax.random.normal(keys[8], (B, S, D), jnp.float32)
    out_self = jax.block_until_ready(multi_headed_attention(params, x, x, x))
    ref_self = _reference(raw, x, x, x, H)
    assert out_self.shape == (B, S, D)
    assert jnp.allclose(out_self, ref_self, atol=2e-3, rtol=2e-3), \
        "self-attention mismatch vs reference"

    # Cross-attention (separate-projection path).
    q_in = jax.random.normal(keys[9], (B, S, D), jnp.float32)
    k_in = jax.random.normal(keys[10], (B, S, D), jnp.float32)
    v_in = jax.random.normal(keys[11], (B, S, D), jnp.float32)
    out_cross = jax.block_until_ready(
        multi_headed_attention(params, q_in, k_in, v_in))
    ref_cross = _reference(raw, q_in, k_in, v_in, H)
    assert jnp.allclose(out_cross, ref_cross, atol=2e-3, rtol=2e-3), \
        "cross-attention mismatch vs reference"

    print("KERNEL_OK")
</pallas_src>

<mosaic_0001>
module attributes {stable_mosaic.version = 11 : i64} {
  func.func @_proj_heads_kernel(%arg0: i32, %arg1: i32, %arg2: i32, %arg3: i32, %arg4: memref<1x8x32xf32, #tpu.memory_space<vmem>>, %arg5: memref<32x96xf32, #tpu.memory_space<vmem>>, %arg6: memref<3x4x1x8xf32, #tpu.memory_space<vmem>>, %arg7: memref<3x1x4x8x8xf32, #tpu.memory_space<vmem>>, %arg8: memref<8x96xf32, #tpu.memory_space<vmem>>) attributes {dimension_semantics = [#tpu.dimension_semantics<parallel>, #tpu.dimension_semantics<parallel>, #tpu.dimension_semantics<parallel>, #tpu.dimension_semantics<arbitrary>], iteration_bounds = array<i64: 2, 1, 1, 1>, scalar_prefetch = 0 : i64, scratch_operands = 1 : i64, tpu.core_type = #tpu.core_type<tc>, window_params = [{transform_indices = @transform_0, window_bounds = array<i64: 1, 8, 32>}, {transform_indices = @transform_1, window_bounds = array<i64: 32, 96>}, {pipeline_mode = #tpu.pipeline_mode<synchronous>, transform_indices = @transform_2, window_bounds = array<i64: 3, 4, 1, 8>}, {transform_indices = @transform_3, window_bounds = array<i64: 3, 1, 4, 8, 8>}]} {
    %c0_i32 = arith.constant 0 : i32
    %0 = arith.cmpi eq, %arg3, %c0_i32 : i32
    %1 = arith.extui %0 : i1 to i32
    %c0_i32_0 = arith.constant 0 : i32
    %2 = arith.cmpi ne, %1, %c0_i32_0 : i32
    scf.if %2 {
      %cst_11 = arith.constant 0.000000e+00 : f32
      %13 = vector.broadcast %cst_11 : f32 to vector<8x96xf32>
      %c0_12 = arith.constant 0 : index
      %c0_13 = arith.constant 0 : index
      %14 = vector.load %arg8[%c0_12, %c0_13] : memref<8x96xf32, #tpu.memory_space<vmem>>, vector<8x96xf32>
      tpu.vector_store %arg8[%c0_12, %c0_13], %13 {strides = array<i32>} : memref<8x96xf32, #tpu.memory_space<vmem>>, vector<8x96xf32>,
    } else {
    }
    %c0 = arith.constant 0 : index
    %c0_1 = arith.constant 0 : index
    %3 = vector.load %arg8[%c0, %c0_1] : memref<8x96xf32, #tpu.memory_space<vmem>>, vector<8x96xf32>
    %c0_2 = arith.constant 0 : index
    %c0_3 = arith.constant 0 : index
    %c0_4 = arith.constant 0 : index
    %4 = vector.load %arg4[%c0_2, %c0_3, %c0_4] : memref<1x8x32xf32, #tpu.memory_space<vmem>>, vector<1x8x32xf32>
    %5 = vector.shape_cast %4 : vector<1x8x32xf32> to vector<8x32xf32>
    %c0_5 = arith.constant 0 : index
    %c0_6 = arith.constant 0 : index
    %6 = vector.load %arg5[%c0_5, %c0_6] : memref<32x96xf32, #tpu.memory_space<vmem>>, vector<32x96xf32>
    %cst = arith.constant dense<0.000000e+00> : vector<8x96xf32>
    %7 = tpu.matmul %5, %6, %cst {dimension_numbers = #tpu.dot_dimension_numbers<[1], [0], [0], [1], [0, 0, 1, 1], [], []>} : vector<8x32xf32>, vector<32x96xf32>, vector<8x96xf32> -> vector<8x96xf32>
    %8 = arith.addf %3, %7 : vector<8x96xf32>
    %c0_7 = arith.constant 0 : index
    %c0_8 = arith.constant 0 : index
    %9 = vector.load %arg8[%c0_7, %c0_8] : memref<8x96xf32, #tpu.memory_space<vmem>>, vector<8x96xf32>
    tpu.vector_store %arg8[%c0_7, %c0_8], %8 {strides = array<i32>} : memref<8x96xf32, #tpu.memory_space<vmem>>, vector<8x96xf32>,
    %c0_i32_9 = arith.constant 0 : i32
    %10 = arith.cmpi eq, %arg3, %c0_i32_9 : i32
    %11 = arith.extui %10 : i1 to i32
    %c0_i32_10 = arith.constant 0 : i32
    %12 = arith.cmpi ne, %11, %c0_i32_10 : i32
    scf.if %12 {
      %c0_11 = arith.constant 0 : index
      %c0_12 = arith.constant 0 : index
      %13 = vector.load %arg8[%c0_11, %c0_12] : memref<8x96xf32, #tpu.memory_space<vmem>>, vector<8x8xf32>
      %c0_13 = arith.constant 0 : index
      %c0_14 = arith.constant 0 : index
      %c0_15 = arith.constant 0 : index
      %c0_16 = arith.constant 0 : index
      %14 = vector.load %arg6[%c0_13, %c0_14, %c0_15, %c0_16] : memref<3x4x1x8xf32, #tpu.memory_space<vmem>>, vector<1x1x1x8xf32>
      %15 = vector.shape_cast %14 : vector<1x1x1x8xf32> to vector<8xf32>
      %16 = vector.shape_cast %15 : vector<8xf32> to vector<1x8xf32>
      %17 = vector.broadcast %16 : vector<1x8xf32> to vector<8x8xf32>
      %18 = arith.addf %13, %17 : vector<8x8xf32>
      %c0_17 = arith.constant 0 : index
      %c0_18 = arith.constant 0 : index
      %c0_19 = arith.constant 0 : index
      %c0_20 = arith.constant 0 : index
      %c0_21 = arith.constant 0 : index
      %19 = vector.load %arg7[%c0_17, %c0_18, %c0_19, %c0_20, %c0_21] : memref<3x1x4x8x8xf32, #tpu.memory_space<vmem>>, vector<1x1x1x8x8xf32>
      %20 = vector.shape_cast %19 : vector<1x1x1x8x8xf32> to vector<8x8xf32>
      %21 = vector.shape_cast %18 : vector<8x8xf32> to vector<1x1x1x8x8xf32>
      tpu.vector_store %arg7[%c0_17, %c0_18, %c0_19, %c0_20, %c0_21], %21 {strides = array<i32>} : memref<3x1x4x8x8xf32, #tpu.memory_space<vmem>>, vector<1x1x1x8x8xf32>,
      %c0_22 = arith.constant 0 : index
      %c8 = arith.constant 8 : index
      %22 = vector.load %arg8[%c0_22, %c8] : memref<8x96xf32, #tpu.memory_space<vmem>>, vector<8x8xf32>
      %c0_23 = arith.constant 0 : index
      %c1 = arith.constant 1 : index
      %c0_24 = arith.constant 0 : index
      %c0_25 = arith.constant 0 : index
      %23 = vector.load %arg6[%c0_23, %c1, %c0_24, %c0_25] : memref<3x4x1x8xf32, #tpu.memory_space<vmem>>, vector<1x1x1x8xf32>
      %24 = vector.shape_cast %23 : vector<1x1x1x8xf32> to vector<8xf32>
      %25 = vector.shape_cast %24 : vector<8xf32> to vector<1x8xf32>
      %26 = vector.broadcast %25 : vector<1x8xf32> to vector<8x8xf32>
      %27 = arith.addf %22, %26 : vector<8x8xf32>
      %c0_26 = arith.constant 0 : index
      %c0_27 = arith.constant 0 : index
      %c1_28 = arith.constant 1 : index
      %c0_29 = arith.constant 0 : index
      %c0_30 = arith.constant 0 : index
      %28 = vector.load %arg7[%c0_26, %c0_27, %c1_28, %c0_29, %c0_30] : memref<3x1x4x8x8xf32, #tpu.memory_space<vmem>>, vector<1x1x1x8x8xf32>
      %29 = vector.shape_cast %28 : vector<1x1x1x8x8xf32> to vector<8x8xf32>
      %30 = vector.shape_cast %27 : vector<8x8xf32> to vector<1x1x1x8x8xf32>
      tpu.vector_store %arg7[%c0_26, %c0_27, %c1_28, %c0_29, %c0_30], %30 {strides = array<i32>} : memref<3x1x4x8x8xf32, #tpu.memory_space<vmem>>, vector<1x1x1x8x8xf32>,
      %c0_31 = arith.constant 0 : index
      %c16 = arith.constant 16 : index
      %31 = vector.load %arg8[%c0_31, %c16] : memref<8x96xf32, #tpu.memory_space<vmem>>, vector<8x8xf32>
      %c0_32 = arith.constant 0 : index
      %c2 = arith.constant 2 : index
      %c0_33 = arith.constant 0 : index
      %c0_34 = arith.constant 0 : index
      %32 = vector.load %arg6[%c0_32, %c2, %c0_33, %c0_34] : memref<3x4x1x8xf32, #tpu.memory_space<vmem>>, vector<1x1x1x8xf32>
      %33 = vector.shape_cast %32 : vector<1x1x1x8xf32> to vector<8xf32>
      %34 = vector.shape_cast %33 : vector<8xf32> to vector<1x8xf32>
      %35 = vector.broadcast %34 : vector<1x8xf32> to vector<8x8xf32>
      %36 = arith.addf %31, %35 : vector<8x8xf32>
      %c0_35 = arith.constant 0 : index
      %c0_36 = arith.constant 0 : index
      %c2_37 = arith.constant 2 : index
      %c0_38 = arith.constant 0 : index
      %c0_39 = arith.constant 0 : index
      %37 = vector.load %arg7[%c0_35, %c0_36, %c2_37, %c0_38, %c0_39] : memref<3x1x4x8x8xf32, #tpu.memory_space<vmem>>, vector<1x1x1x8x8xf32>
      %38 = vector.shape_cast %37 : vector<1x1x1x8x8xf32> to vector<8x8xf32>
      %39 = vector.shape_cast %36 : vector<8x8xf32> to vector<1x1x1x8x8xf32>
      tpu.vector_store %arg7[%c0_35, %c0_36, %c2_37, %c0_38, %c0_39], %39 {strides = array<i32>} : memref<3x1x4x8x8xf32, #tpu.memory_space<vmem>>, vector<1x1x1x8x8xf32>,
      %c0_40 = arith.constant 0 : index
      %c24 = arith.constant 24 : index
      %40 = vector.load %arg8[%c0_40, %c24] : memref<8x96xf32, #tpu.memory_space<vmem>>, vector<8x8xf32>
      %c0_41 = arith.constant 0 : index
      %c3 = arith.constant 3 : index
      %c0_42 = arith.constant 0 : index
      %c0_43 = arith.constant 0 : index
      %41 = vector.load %arg6[%c0_41, %c3, %c0_42, %c0_43] : memref<3x4x1x8xf32, #tpu.memory_space<vmem>>, vector<1x1x1x8xf32>
      %42 = vector.shape_cast %41 : vector<1x1x1x8xf32> to vector<8xf32>
      %43 = vector.shape_cast %42 : vector<8xf32> to vector<1x8xf32>
      %44 = vector.broadcast %43 : vector<1x8xf32> to vector<8x8xf32>
      %45 = arith.addf %40, %44 : vector<8x8xf32>
      %c0_44 = arith.constant 0 : index
      %c0_45 = arith.constant 0 : index
      %c3_46 = arith.constant 3 : index
      %c0_47 = arith.constant 0 : index
      %c0_48 = arith.constant 0 : index
      %46 = vector.load %arg7[%c0_44, %c0_45, %c3_46, %c0_47, %c0_48] : memref<3x1x4x8x8xf32, #tpu.memory_space<vmem>>, vector<1x1x1x8x8xf32>
      %47 = vector.shape_cast %46 : vector<1x1x1x8x8xf32> to vector<8x8xf32>
      %48 = vector.shape_cast %45 : vector<8x8xf32> to vector<1x1x1x8x8xf32>
      tpu.vector_store %arg7[%c0_44, %c0_45, %c3_46, %c0_47, %c0_48], %48 {strides = array<i32>} : memref<3x1x4x8x8xf32, #tpu.memory_space<vmem>>, vector<1x1x1x8x8xf32>,
      %c0_49 = arith.constant 0 : index
      %c32 = arith.constant 32 : index
      %49 = vector.load %arg8[%c0_49, %c32] : memref<8x96xf32, #tpu.memory_space<vmem>>, vector<8x8xf32>
      %c1_50 = arith.constant 1 : index
      %c0_51 = arith.constant 0 : index
      %c0_52 = arith.constant 0 : index
      %c0_53 = arith.constant 0 : index
      %50 = vector.load %arg6[%c1_50, %c0_51, %c0_52, %c0_53] : memref<3x4x1x8xf32, #tpu.memory_space<vmem>>, vector<1x1x1x8xf32>
      %51 = vector.shape_cast %50 : vector<1x1x1x8xf32> to vector<8xf32>
      %52 = vector.shape_cast %51 : vector<8xf32> to vector<1x8xf32>
      %53 = vector.broadcast %52 : vector<1x8xf32> to vector<8x8xf32>
      %54 = arith.addf %49, %53 : vector<8x8xf32>
      %c1_54 = arith.constant 1 : index
      %c0_55 = arith.constant 0 : index
      %c0_56 = arith.constant 0 : index
      %c0_57 = arith.constant 0 : index
      %c0_58 = arith.constant 0 : index
      %55 = vector.load %arg7[%c1_54, %c0_55, %c0_56, %c0_57, %c0_58] : memref<3x1x4x8x8xf32, #tpu.memory_space<vmem>>, vector<1x1x1x8x8xf32>
      %56 = vector.shape_cast %55 : vector<1x1x1x8x8xf32> to vector<8x8xf32>
      %57 = vector.shape_cast %54 : vector<8x8xf32> to vector<1x1x1x8x8xf32>
      tpu.vector_store %arg7[%c1_54, %c0_55, %c0_56, %c0_57, %c0_58], %57 {strides = array<i32>} : memref<3x1x4x8x8xf32, #tpu.memory_space<vmem>>, vector<1x1x1x8x8xf32>,
      %c0_59 = arith.constant 0 : index
      %c40 = arith.constant 40 : index
      %58 = vector.load %arg8[%c0_59, %c40] : memref<8x96xf32, #tpu.memory_space<vmem>>, vector<8x8xf32>
      %c1_60 = arith.constant 1 : index
      %c1_61 = arith.constant 1 : index
      %c0_62 = arith.constant 0 : index
      %c0_63 = arith.constant 0 : index
      %59 = vector.load %arg6[%c1_60, %c1_61, %c0_62, %c0_63] : memref<3x4x1x8xf32, #tpu.memory_space<vmem>>, vector<1x1x1x8xf32>
      %60 = vector.shape_cast %59 : vector<1x1x1x8xf32> to vector<8xf32>
      %61 = vector.shape_cast %60 : vector<8xf32> to vector<1x8xf32>
      %62 = vector.broadcast %61 : vector<1x8xf32> to vector<8x8xf32>
      %63 = arith.addf %58, %62 : vector<8x8xf32>
      %c1_64 = arith.constant 1 : index
      %c0_65 = arith.constant 0 : index
      %c1_66 = arith.constant 1 : index
      %c0_67 = arith.constant 0 : index
      %c0_68 = arith.constant 0 : index
      %64 = vector.load %arg7[%c1_64, %c0_65, %c1_66, %c0_67, %c0_68] : memref<3x1x4x8x8xf32, #tpu.memory_space<vmem>>, vector<1x1x1x8x8xf32>
      %65 = vector.shape_cast %64 : vector<1x1x1x8x8xf32> to vector<8x8xf32>
      %66 = vector.shape_cast %63 : vector<8x8xf32> to vector<1x1x1x8x8xf32>
      tpu.vector_store %arg7[%c1_64, %c0_65, %c1_66, %c0_67, %c0_68], %66 {strides = array<i32>} : memref<3x1x4x8x8xf32, #tpu.memory_space<vmem>>, vector<1x1x1x8x8xf32>,
      %c0_69 = arith.constant 0 : index
      %c48 = arith.constant 48 : index
      %67 = vector.load %arg8[%c0_69, %c48] : memref<8x96xf32, #tpu.memory_space<vmem>>, vector<8x8xf32>
      %c1_70 = arith.constant 1 : index
      %c2_71 = arith.constant 2 : index
      %c0_72 = arith.constant 0 : index
      %c0_73 = arith.constant 0 : index
      %68 = vector.load %arg6[%c1_70, %c2_71, %c0_72, %c0_73] : memref<3x4x1x8xf32, #tpu.memory_space<vmem>>, vector<1x1x1x8xf32>
      %69 = vector.shape_cast %68 : vector<1x1x1x8xf32> to vector<8xf32>
      %70 = vector.shape_cast %69 : vector<8xf32> to vector<1x8xf32>
      %71 = vector.broadcast %70 : vector<1x8xf32> to vector<8x8xf32>
      %72 = arith.addf %67, %71 : vector<8x8xf32>
      %c1_74 = arith.constant 1 : index
      %c0_75 = arith.constant 0 : index
      %c2_76 = arith.constant 2 : index
      %c0_77 = arith.constant 0 : index
      %c0_78 = arith.constant 0 : index
      %73 = vector.load %arg7[%c1_74, %c0_75, %c2_76, %c0_77, %c0_78] : memref<3x1x4x8x8xf32, #tpu.memory_space<vmem>>, vector<1x1x1x8x8xf32>
      %74 = vector.shape_cast %73 : vector<1x1x1x8x8xf32> to vector<8x8xf32>
      %75 = vector.shape_cast %72 : vector<8x8xf32> to vector<1x1x1x8x8xf32>
      tpu.vector_store %arg7[%c1_74, %c0_75, %c2_76, %c0_77, %c0_78], %75 {strides = array<i32>} : memref<3x1x4x8x8xf32, #tpu.memory_space<vmem>>, vector<1x1x1x8x8xf32>,
      %c0_79 = arith.constant 0 : index
      %c56 = arith.constant 56 : index
      %76 = vector.load %arg8[%c0_79, %c56] : memref<8x96xf32, #tpu.memory_space<vmem>>, vector<8x8xf32>
      %c1_80 = arith.constant 1 : index
      %c3_81 = arith.constant 3 : index
      %c0_82 = arith.constant 0 : index
      %c0_83 = arith.constant 0 : index
      %77 = vector.load %arg6[%c1_80, %c3_81, %c0_82, %c0_83] : memref<3x4x1x8xf32, #tpu.memory_space<vmem>>, vector<1x1x1x8xf32>
      %78 = vector.shape_cast %77 : vector<1x1x1x8xf32> to vector<8xf32>
      %79 = vector.shape_cast %78 : vector<8xf32> to vector<1x8xf32>
      %80 = vector.broadcast %79 : vector<1x8xf32> to vector<8x8xf32>
      %81 = arith.addf %76, %80 : vector<8x8xf32>
      %c1_84 = arith.constant 1 : index
      %c0_85 = arith.constant 0 : index
      %c3_86 = arith.constant 3 : index
      %c0_87 = arith.constant 0 : index
      %c0_88 = arith.constant 0 : index
      %82 = vector.load %arg7[%c1_84, %c0_85, %c3_86, %c0_87, %c0_88] : memref<3x1x4x8x8xf32, #tpu.memory_space<vmem>>, vector<1x1x1x8x8xf32>
      %83 = vector.shape_cast %82 : vector<1x1x1x8x8xf32> to vector<8x8xf32>
      %84 = vector.shape_cast %81 : vector<8x8xf32> to vector<1x1x1x8x8xf32>
      tpu.vector_store %arg7[%c1_84, %c0_85, %c3_86, %c0_87, %c0_88], %84 {strides = array<i32>} : memref<3x1x4x8x8xf32, #tpu.memory_space<vmem>>, vector<1x1x1x8x8xf32>,
      %c0_89 = arith.constant 0 : index
      %c64 = arith.constant 64 : index
      %85 = vector.load %arg8[%c0_89, %c64] : memref<8x96xf32, #tpu.memory_space<vmem>>, vector<8x8xf32>
      %c2_90 = arith.constant 2 : index
      %c0_91 = arith.constant 0 : index
      %c0_92 = arith.constant 0 : index
      %c0_93 = arith.constant 0 : index
      %86 = vector.load %arg6[%c2_90, %c0_91, %c0_92, %c0_93] : memref<3x4x1x8xf32, #tpu.memory_space<vmem>>, vector<1x1x1x8xf32>
      %87 = vector.shape_cast %86 : vector<1x1x1x8xf32> to vector<8xf32>
      %88 = vector.shape_cast %87 : vector<8xf32> to vector<1x8xf32>
      %89 = vector.broadcast %88 : vector<1x8xf32> to vector<8x8xf32>
      %90 = arith.addf %85, %89 : vector<8x8xf32>
      %c2_94 = arith.constant 2 : index
      %c0_95 = arith.constant 0 : index
      %c0_96 = arith.constant 0 : index
      %c0_97 = arith.constant 0 : index
      %c0_98 = arith.constant 0 : index
      %91 = vector.load %arg7[%c2_94, %c0_95, %c0_96, %c0_97, %c0_98] : memref<3x1x4x8x8xf32, #tpu.memory_space<vmem>>, vector<1x1x1x8x8xf32>
      %92 = vector.shape_cast %91 : vector<1x1x1x8x8xf32> to vector<8x8xf32>
      %93 = vector.shape_cast %90 : vector<8x8xf32> to vector<1x1x1x8x8xf32>
      tpu.vector_store %arg7[%c2_94, %c0_95, %c0_96, %c0_97, %c0_98], %93 {strides = array<i32>} : memref<3x1x4x8x8xf32, #tpu.memory_space<vmem>>, vector<1x1x1x8x8xf32>,
      %c0_99 = arith.constant 0 : index
      %c72 = arith.constant 72 : index
      %94 = vector.load %arg8[%c0_99, %c72] : memref<8x96xf32, #tpu.memory_space<vmem>>, vector<8x8xf32>
      %c2_100 = arith.constant 2 : index
      %c1_101 = arith.constant 1 : index
      %c0_102 = arith.constant 0 : index
      %c0_103 = arith.constant 0 : index
      %95 = vector.load %arg6[%c2_100, %c1_101, %c0_102, %c0_103] : memref<3x4x1x8xf32, #tpu.memory_space<vmem>>, vector<1x1x1x8xf32>
      %96 = vector.shape_cast %95 : vector<1x1x1x8xf32> to vector<8xf32>
      %97 = vector.shape_cast %96 : vector<8xf32> to vector<1x8xf32>
      %98 = vector.broadcast %97 : vector<1x8xf32> to vector<8x8xf32>
      %99 = arith.addf %94, %98 : vector<8x8xf32>
      %c2_104 = arith.constant 2 : index
      %c0_105 = arith.constant 0 : index
      %c1_106 = arith.constant 1 : index
      %c0_107 = arith.constant 0 : index
      %c0_108 = arith.constant 0 : index
      %100 = vector.load %arg7[%c2_104, %c0_105, %c1_106, %c0_107, %c0_108] : memref<3x1x4x8x8xf32, #tpu.memory_space<vmem>>, vector<1x1x1x8x8xf32>
      %101 = vector.shape_cast %100 : vector<1x1x1x8x8xf32> to vector<8x8xf32>
      %102 = vector.shape_cast %99 : vector<8x8xf32> to vector<1x1x1x8x8xf32>
      tpu.vector_store %arg7[%c2_104, %c0_105, %c1_106, %c0_107, %c0_108], %102 {strides = array<i32>} : memref<3x1x4x8x8xf32, #tpu.memory_space<vmem>>, vector<1x1x1x8x8xf32>,
      %c0_109 = arith.constant 0 : index
      %c80 = arith.constant 80 : index
      %103 = vector.load %arg8[%c0_109, %c80] : memref<8x96xf32, #tpu.memory_space<vmem>>, vector<8x8xf32>
      %c2_110 = arith.constant 2 : index
      %c2_111 = arith.constant 2 : index
      %c0_112 = arith.constant 0 : index
      %c0_113 = arith.constant 0 : index
      %104 = vector.load %arg6[%c2_110, %c2_111, %c0_112, %c0_113] : memref<3x4x1x8xf32, #tpu.memory_space<vmem>>, vector<1x1x1x8xf32>
      %105 = vector.shape_cast %104 : vector<1x1x1x8xf32> to vector<8xf32>
      %106 = vector.shape_cast %105 : vector<8xf32> to vector<1x8xf32>
      %107 = vector.broadcast %106 : vector<1x8xf32> to vector<8x8xf32>
      %108 = arith.addf %103, %107 : vector<8x8xf32>
      %c2_114 = arith.constant 2 : index
      %c0_115 = arith.constant 0 : index
      %c2_116 = arith.constant 2 : index
      %c0_117 = arith.constant 0 : index
      %c0_118 = arith.constant 0 : index
      %109 = vector.load %arg7[%c2_114, %c0_115, %c2_116, %c0_117, %c0_118] : memref<3x1x4x8x8xf32, #tpu.memory_space<vmem>>, vector<1x1x1x8x8xf32>
      %110 = vector.shape_cast %109 : vector<1x1x1x8x8xf32> to vector<8x8xf32>
      %111 = vector.shape_cast %108 : vector<8x8xf32> to vector<1x1x1x8x8xf32>
      tpu.vector_store %arg7[%c2_114, %c0_115, %c2_116, %c0_117, %c0_118], %111 {strides = array<i32>} : memref<3x1x4x8x8xf32, #tpu.memory_space<vmem>>, vector<1x1x1x8x8xf32>,
      %c0_119 = arith.constant 0 : index
      %c88 = arith.constant 88 : index
      %112 = vector.load %arg8[%c0_119, %c88] : memref<8x96xf32, #tpu.memory_space<vmem>>, vector<8x8xf32>
      %c2_120 = arith.constant 2 : index
      %c3_121 = arith.constant 3 : index
      %c0_122 = arith.constant 0 : index
      %c0_123 = arith.constant 0 : index
      %113 = vector.load %arg6[%c2_120, %c3_121, %c0_122, %c0_123] : memref<3x4x1x8xf32, #tpu.memory_space<vmem>>, vector<1x1x1x8xf32>
      %114 = vector.shape_cast %113 : vector<1x1x1x8xf32> to vector<8xf32>
      %115 = vector.shape_cast %114 : vector<8xf32> to vector<1x8xf32>
      %116 = vector.broadcast %115 : vector<1x8xf32> to vector<8x8xf32>
      %117 = arith.addf %112, %116 : vector<8x8xf32>
      %c2_124 = arith.constant 2 : index
      %c0_125 = arith.constant 0 : index
      %c3_126 = arith.constant 3 : index
      %c0_127 = arith.constant 0 : index
      %c0_128 = arith.constant 0 : index
      %118 = vector.load %arg7[%c2_124, %c0_125, %c3_126, %c0_127, %c0_128] : memref<3x1x4x8x8xf32, #tpu.memory_space<vmem>>, vector<1x1x1x8x8xf32>
      %119 = vector.shape_cast %118 : vector<1x1x1x8x8xf32> to vector<8x8xf32>
      %120 = vector.shape_cast %117 : vector<8x8xf32> to vector<1x1x1x8x8xf32>
      tpu.vector_store %arg7[%c2_124, %c0_125, %c3_126, %c0_127, %c0_128], %120 {strides = array<i32>} : memref<3x1x4x8x8xf32, #tpu.memory_space<vmem>>, vector<1x1x1x8x8xf32>,
    } else {
    }
    return
  }
  func.func @transform_0(%arg0: i32, %arg1: i32, %arg2: i32, %arg3: i32) -> (i32, i32, i32) {
    %c0_i32 = arith.constant 0 : i32
    return %arg0, %arg1, %arg3 : i32, i32, i32
  }
  func.func @transform_1(%arg0: i32, %arg1: i32, %arg2: i32, %arg3: i32) -> (i32, i32) {
    %c0_i32 = arith.constant 0 : i32
    %c0_i32_0 = arith.constant 0 : i32
    return %arg3, %c0_i32 : i32, i32
  }
  func.func @transform_2(%arg0: i32, %arg1: i32, %arg2: i32, %arg3: i32) -> (i32, i32, i32, i32) {
    %c0_i32 = arith.constant 0 : i32
    %c0_i32_0 = arith.constant 0 : i32
    %c0_i32_1 = arith.constant 0 : i32
    %c0_i32_2 = arith.constant 0 : i32
    %c0_i32_3 = arith.constant 0 : i32
    return %c0_i32, %c0_i32_0, %c0_i32_1, %c0_i32_2 : i32, i32, i32, i32
  }
  func.func @transform_3(%arg0: i32, %arg1: i32, %arg2: i32, %arg3: i32) -> (i32, i32, i32, i32, i32) {
    %c0_i32 = arith.constant 0 : i32
    %c0_i32_0 = arith.constant 0 : i32
    %c0_i32_1 = arith.constant 0 : i32
    %c0_i32_2 = arith.constant 0 : i32
    return %c0_i32, %arg0, %c0_i32_0, %arg1, %c0_i32_1 : i32, i32, i32, i32, i32
  }
}

</mosaic_0001>

<bundles_post_ra>
// kernel: tpu_custom_call.1
= control target key start
LH: loop header
LB: loop body
LE: loop exit
PB: predicated region body
PF: predicated region fallthrough
CT: control target
= control target key end

     0   :  { %8 = vsyncpa [#allocation4], 0  ;;  %s1378_s0 = inlined_call_operand.hbm [shape: f32[2,8,32], index: 0, kind: input, shape index: {}]   ;;  %s1379_s1 = inlined_call_operand.hbm [shape: f32[32,96], index: 1, kind: input, shape index: {}]   ;;  %s1380_s2 = inlined_call_operand.hbm [shape: f32[3,4,1,8], index: 2, kind: input, shape index: {}]   ;;  %s1381_s3 = inlined_call_operand.hbm [shape: f32[3,2,4,8,8], index: 3, kind: output, shape index: {}]  }
   0x1   :  { %10 = vsyncpa [#allocation4 + $0x1], 0 }
   0x2   :  { %11 = vsyncpa [#allocation7], 0 }
   0x3   :  { %12 = vsyncpa [#allocation5], 0 }
   0x4   :  { %14 = vsyncpa [#allocation5 + $0x1], 0  ;;  %s1092_s12 = smov 0   ;;  %s1094_s13 = smov 0  }
   0x5   :  { %s1096_s14 = smov 0   ;;  %s1098_s15 = smov 0  }
   0x6   :  { %s1100_s16 = smov 0   ;;  %s1102_s17 = smov 0  }
   0x7 LB: > { %s712_s18 = sadd.s32 4294967295, %s1038_s17   ;;  %s713_s19 = sadd.s32 4294967294, %s1038_s17   ;;  %s1038_s17 = sphi %s1102_s17, %s20_s17   ;;  %s1034_s16 = sphi %s1100_s16, %s1403_s16   ;;  %s1030_s15 = sphi %s1098_s15, %s1402_s15   ;;  %s1026_s14 = sphi %s1096_s14, %s1401_s14   ;;  %s1022_s13 = sphi %s1094_s13, %s1400_s13   ;;  %s1018_s12 = sphi %s1092_s12, %s1399_s12  }
   0x8   : > { %p70_p0 = scmp.ne.s32.totalorder %s1022_s13, %s1018_s12  ;;  %p1126_p1 = scmp.eq.s32.totalorder %s712_s18, 0 }
   0x9   : > { %p1130_p2 = scmp.eq.s32.totalorder %s712_s18, 1  ;;  %p149_p3 = scmp.eq.s32.totalorder %s713_s19, 1 }
   0xa   : > { %s1386_s20 = scalar_select %p1126_p1, 1, 0 }
   0xb   : > { %p1136_p4 = por %p1126_p1, %p70_p0  ;;  %p714_p5 = scmp.ge.s32.totalorder %s1038_s17, 1 }
   0xc   : > { %p1141_p6 = por %p149_p3, %p70_p0  ;;  %p156_p7 = scmp.lt.s32.totalorder %s1038_s17, 3 }
   0xd   : > { %s1388_s22 = scalar_select %p1136_p4, 1, 0 }
   0xe   : > { %s1389_s23 = scalar_select %p1141_p6, 1, 0 }
   0xf   : > { %p1146_p8 = pnand %p714_p5, %p156_p7  ;;  %s1040_s25 = smov [#allocation6]  }
  0x10   : > { %s171_s26 = sshll.u32 %s1040_s25, 4  ;;  %s1041_s28 = smov [#allocation8]   ;;  %s1150_s26 = int_to_ptr.vmem [resolvable:$true] %s171_s26 }
  0x11   : > { %p794_p9 = pneg %p1146_p8  ;;  %s184_s29 = sshll.u32 %s1041_s28, 4  ;;  %s1161_s29 = int_to_ptr.vmem [resolvable:$true] %s184_s29 }
  0x12   : > { %s894_s5 = scalar_lea.hbm %s1379_s1, 512 }
  0x13   : > { %p1157_p11 = pnand %p794_p9, %p1126_p1  ;;  %p895_p12 = scmp.ne.s32.totalorder %s1379_s1, %s894_s5 }
  0x14   : > { %p901_p5 = scmp.lt.u32.totalorder %s894_s5, %s1379_s1 }
  0x15   : > { %p896_p13 = pneg %p1157_p11 }
  0x17   : > { %p897_p0 = pnand %p896_p13, %p895_p12 }
  0x19   : > { %p898_p3 = pneg %p897_p0 }
  0x1b   : > { %p903_p7 = pnand %p901_p5, %p898_p3 }
  0x1d   : > { %906 = shalt.err (!%p903_p7)
}
  0x1e   : > { %s907_s10 = scalar_lea.vmem %s1150_s26, 512  ;;  %p915_p1 = scmp.lt.s32.totalorder %s1150_s26, %s1150_s26 }
  0x1f   : > { %p908_p9 = scmp.ne.s32.totalorder %s1150_s26, %s907_s10  ;;  %p916_p12 = scmp.lt.s32.totalorder %s907_s10, %s907_s10 }
  0x21   : > { %p910_p10 = pnand %p908_p9, %p896_p13  ;;  %p917_p0 = por %p916_p12, %p915_p1 }
  0x23   : > { %p911_p6 = pneg %p910_p10 }
  0x25   : > { %p918_p4 = pnand %p917_p0, %p911_p6 }
  0x27   : > { %921 = shalt.err (!%p918_p4)
}
  0x28   : > { %s1042_s11 = smov 128   ;;  %s1043_s18 = smov 8  }
  0x29   : > { %797 = dma.hbm_to_vmem [thread:$0]  (!%p1157_p11), %s1379_s1, 512, %s1150_s26, [#allocation7], %s1042_s11, %s1042_s11, %s1043_s18  }
  0x2a   : > { %s922_s4 = scalar_lea.hbm %s1380_s2, 192 }
  0x2b   : > { %p923_p1 = scmp.ne.s32.totalorder %s1380_s2, %s922_s4  ;;  %p929_p10 = scmp.lt.u32.totalorder %s922_s4, %s1380_s2 }
  0x2d   : > { %p925_p4 = pnand %p923_p1, %p896_p13 }
  0x2f   : > { %p926_p6 = pneg %p925_p4 }
  0x31   : > { %p931_p3 = pnand %p929_p10, %p926_p6 }
  0x33   : > { %934 = shalt.err (!%p931_p3)
}
  0x34   : > { %s935_s26 = scalar_lea.vmem %s1161_s29, 192  ;;  %p943_p12 = scmp.lt.s32.totalorder %s1161_s29, %s1161_s29 }
  0x35   : > { %p936_p5 = scmp.ne.s32.totalorder %s1161_s29, %s935_s26  ;;  %p944_p0 = scmp.lt.s32.totalorder %s935_s26, %s935_s26 }
  0x37   : > { %p938_p7 = pnand %p936_p5, %p896_p13  ;;  %p945_p1 = por %p944_p0, %p943_p12 }
  0x39   : > { %p939_p9 = pneg %p938_p7 }
  0x3b   : > { %p946_p4 = pnand %p945_p1, %p939_p9 }
  0x3d   : > { %949 = shalt.err (!%p946_p4)
}
  0x3e   : > { %s1044_s9 = smov 16   ;;  %s1045_s10 = smov 1  }
  0x3f   : > { %800 = dma.hbm_to_vmem [thread:$0]  (!%p1157_p11), %s1380_s2, 192, %s1161_s29, [#allocation7], %s1044_s9, %s1044_s9, %s1045_s10  }
  0x40   : > { %s46_s19 = sadd.s32 1, %s1034_s16  ;;  %s57_s25 = sadd.s32 1, %s1026_s14 }
  0x41   : > { %p48_p13 = scmp.ge.s32.totalorder %s46_s19, 2  ;;  %p64_p6 = scmp.ne.s32.totalorder %s1026_s14, %s1022_s13 }
  0x42   : > { %p65_p10 = scmp.eq.s32.totalorder %s1038_s17, 0  ;;  %p811_p3 = scmp.lt.s32.totalorder %s1038_s17, 2 }
  0x43   : > { %s1405_s19 = smov (%p48_p13, %s46_s19), 0  ;;  %p1225_p7 = por %p1130_p2, %p64_p6 }
  0x44   : > { %p66_p5 = por %p65_p10, %p64_p6  ;;  %s50_s27 = ssub.s32 %s1034_s16, %s1405_s19 }
  0x45   : > { %s1392_s28 = scalar_select %p1225_p7, 1, 0 }
  0x46   : > { %s198_s30 = sand.u32 1, %s1026_s14   ;;  %p55_p9 = scmp.eq.s32.totalorder %s50_s27, 0 }
  0x47   : > { %s718_s29 = sshll.u32 %s198_s30, 3  ;;  %s719_s4 = sshll.u32 %s1034_s16, 7 }
  0x48   : > { %s1234_s5 = scalar_select %p55_p9, %s1026_s14, %s57_s25  }
  0x49   : > { %s1239_s8 = scalar_lea.hbm %s1378_s0, %s719_s4  ;;  %s202_s21 = scalar_lea.vmem [#allocation3], %s718_s29 }
  0x4a   : > { %s211_s26 = sshll.u32 %s202_s21, 4  ;;  %p1243_p2 = pnand %p811_p3, %p66_p5  ;;  %s1247_s26 = int_to_ptr.vmem [resolvable:$true] %s211_s26 }
  0x4b   : > { %s199_s10 = scalar_lea.sflag [#allocation4], %s198_s30  ;;  %s950_s11 = scalar_lea.hbm %s1239_s8, 128 }
  0x4c   : > { %p951_p11 = scmp.ne.s32.totalorder %s1239_s8, %s950_s11  ;;  %p952_p12 = pneg %p1243_p2 }
  0x4d   : > { %s955_s27 = scalar_lea.hbm %s1378_s0, 256  ;;  %p956_p4 = scmp.lt.u32.totalorder %s1239_s8, %s1378_s0 }
  0x4e   : > { %p953_p0 = pnand %p952_p12, %p951_p11  ;;  %p957_p13 = scmp.lt.u32.totalorder %s955_s27, %s950_s11 }
  0x4f   : > { %p959_p10 = scmp.lt.u32.totalorder %s950_s11, %s1239_s8 }
  0x50   : > { %p954_p1 = pneg %p953_p0  ;;  %p958_p6 = por %p957_p13, %p956_p4 }
  0x52   : > { %p960_p3 = por %p959_p10, %p958_p6 }
  0x54   : > { %p961_p5 = pnand %p960_p3, %p954_p1 }
  0x56   : > { %964 = shalt.err (!%p961_p5)
}
  0x57   : > { %s965_s30 = scalar_lea.vmem %s1247_s26, 128  ;;  %s1046_s6 = smov [#allocation3]  }
  0x58   : > { %p966_p9 = scmp.ne.s32.totalorder %s1247_s26, %s965_s30  ;;  %s970_s7 = sshll.u32 %s1046_s6, 4  ;;  %s971_s7 = int_to_ptr.vmem [resolvable:$false] %s970_s7 }
  0x59   : > { %s972_s21 = scalar_lea.vmem %s971_s7, 256  ;;  %p973_p7 = scmp.lt.s32.totalorder %s1247_s26, %s971_s7 }
  0x5a   : > { %p968_p11 = pnand %p966_p9, %p952_p12  ;;  %p974_p4 = scmp.lt.s32.totalorder %s972_s21, %s965_s30 }
  0x5c   : > { %p969_p0 = pneg %p968_p11  ;;  %p975_p13 = por %p974_p4, %p973_p7 }
  0x5e   : > { %p976_p6 = pnand %p975_p13, %p969_p0 }
  0x60   : > { %979 = shalt.err (!%p976_p6)
}
  0x61   : > { %804 = dma.hbm_to_vmem [thread:$0]  (!%p1243_p2), %s1239_s8, 128, %s1247_s26, %s199_s10  }
  0x62   : > { %220 = sbr.rel (%p1146_p8) target bundleno = 491 (0x1eb), region = 32  ;;  %s1277_s11 = sand.u32 (!%p1146_p8), 1, %s1022_s13  }
  0x63   : > { %s721_s18 = sshll.u32 (!%p1146_p8), %s1277_s11, 3  ;;  %s223_s25 = scalar_lea.sflag (!%p1146_p8), [#allocation4], %s1277_s11 }
  0x64   : > { %s1281_s27 = scalar_lea.vmem (!%p1146_p8), [#allocation3], %s721_s18  ;;  %p1394_p7 = scmp.ne.s32.totalorder (!%p1146_p8), %s1388_s22, 0 }
  0x69   : > { %1005 = dma.done.wait (%p1394_p7), %s223_s25, 128  }
  0x6a   : > { %1007 = vsyncadd (%p1394_p7), %s223_s25, 4294967168  ;;  %p1395_p2 = scmp.ne.s32.totalorder %s1386_s20, 0 }
  0x6c   : > { %1009 = dma.done.wait (%p1395_p2), [#allocation7], 704  }
  0x6d   : > { %1011 = vsyncadd (%p1395_p2), [#allocation7], 4294966592  ;;  %vm262_vm0 = vcmask 785408   ;;  %v1047_v0 = vmov 0.0|0.0   ;;  %v1048_v1 = vmov 0.0   ;;  %vm1049_vm1 = vmmov 0  }
  0x6e   : > { %769 = vmatprep.subr.bf16.mxu0 %v1047_v0  ;;  %263 = vst.msk [vmem:[#allocation2] sm:$0xff] %vm262_vm0, %v1048_v1  ;;  %766 = vmatprep.mubr.msk.f32.mxu0 %vm1049_vm1, %v1048_v1  ;;  %v266_v2 = vld [vmem:[#allocation6] sm:$0xff]  ;;  %v267_v3 = vld [vmem:[#allocation6 + $0x8] sm:$0xff]  ;;  %v268_v4 = vld [vmem:[#allocation6 + $0x10] sm:$0xff]  ;;  %s1050_s22 = smov 8   ;;  %s1051_s20 = smov 24  }
  0x6f   : > { %v770_v5 = vpack.c.bf16 %v267_v3, %v266_v2  ;;  %v269_v6 = vld [vmem:[#allocation6 + $0x18] sm:$0xff]  ;;  %v726_v7 = vld [vmem:[#allocation8 + $0x1] ss:$0 sm:$0xff]  ;;  %v730_v8 = vld [vmem:[#allocation8 + $0x3] ss:$0 sm:$0xff]  ;;  %s1052_s24 = smov 16  }
  0x70   : > { %369 = vrot.lane.b32.xlu0 %v726_v7, %s1050_s22  ;;  %v773_v9 = vpack.c.bf16 %v269_v6, %v268_v4  ;;  %405 = vrot.lane.b32.xlu1 %v730_v8, %s1051_s20  ;;  %v728_v10 = vld [vmem:[#allocation8 + $0x2] ss:$0 sm:$0xff]  ;;  %v732_v11 = vld [vmem:[#allocation8 + $0x4] ss:$0 sm:$0xff]  ;;  %v265_v12 = vld [vmem:[%s1281_s27] sm:$0xff]  ;;  %vm270_vm2 = vcmask 261120  }
  0x71   : > { %771 = vmatpush3.bf16.msra.mxu0 %v770_v5  ;;  %s1053_s8 = smov 32   ;;  %v734_v13 = vld [vmem:[#allocation8 + $0x5] ss:$0 sm:$0xff]  ;;  %v736_v14 = vld [vmem:[#allocation8 + $0x6] ss:$0 sm:$0xff]  ;;  %s1054_s26 = smov 40  }
  0x72   : > { %772 = vmatprep.subr.bf16.mxu0 %v1047_v0  ;;  %s1055_s9 = smov 48   ;;  %v738_v15 = vld [vmem:[#allocation8 + $0x7] ss:$0 sm:$0xff]  ;;  %v740_v16 = vld [vmem:[#allocation8 + $0x8] ss:$0 sm:$0xff]  ;;  %s1056_s10 = smov 56  }
  0x73   : > { %s1057_s29 = smov 64   ;;  %v742_v17 = vld [vmem:[#allocation8 + $0x9] ss:$0 sm:$0xff]  ;;  %v744_v18 = vld [vmem:[#allocation8 + $0xa] ss:$0 sm:$0xff]  ;;  %s1058_s4 = smov 72  }
  0x74   : > { %387 = vrot.lane.b32.xlu0 %v728_v10, %s1052_s24  ;;  %423 = vrot.lane.b32.xlu1 %v732_v11, %s1053_s8  ;;  %s1059_s30 = smov 80   ;;  %v746_v19 = vld [vmem:[#allocation8 + $0xb] ss:$0 sm:$0xff]  ;;  %s1060_s6 = smov 88   ;;  %v725_v28 = vld [vmem:[#allocation8] ss:$0 sm:$0xff] }
  0x75   : > { %774 = vmatpush3.bf16.msra.mxu0 %v773_v9  ;;  %v264_v20 = vld [vmem:[#allocation2] sm:$0xff]  ;;  %s775_s7 = smul.u32 96, %s1277_s11  ;;  %vm359_vm3 = vcmask 64512   ;;  %s1061_s18 = smov 112  }
  0x76   : > { %s1062_s25 = smov 120   ;;  %s1063_s27 = smov 96  }
  0x77   : > { %s1302_s21 = scalar_lea.vmem [#allocation9], %s775_s7  ;;  %s1064_s22 = smov 104  }
  0x78   : > { %767 = vmatmul.mubr.msk.f32.vlgmr.msra.gmra.mrb[0].mxu0 %vm270_vm2, %v265_v12  ;;  %441 = vrot.lane.b32.xlu0 %v734_v13, %s1054_s26  ;;  %s560_s20 = scalar_lea.sflag [#allocation5], %s1277_s11 }
  0x79   : > { %459 = vrot.lane.b32.xlu1 %v736_v14, %s1055_s9 }
  0x7c   : > { %477 = vrot.lane.b32.xlu0 %v738_v15, %s1056_s10 }
  0x7d   : > { %495 = vrot.lane.b32.xlu1 %v740_v16, %s1057_s29 }
  0x80   : > { %513 = vrot.lane.b32.xlu0 %v742_v17, %s1058_s4 }
  0x81   : > { %531 = vrot.lane.b32.xlu1 %v744_v18, %s1059_s30 }
  0x84   : > { %549 = vrot.lane.b32.xlu0 %v746_v19, %s1060_s6 }
  0xe2   : > { %v370_v21 = vpop.permute.xlu0 %369  ;;  %v406_v23 = vpop.permute.xlu1 %405 }
  0xe6   : > { %v388_v26 = vpop.permute.xlu0 %387  ;;  %v424_v27 = vpop.permute.xlu1 %423 }
  0xea   : > { %v442_v31 = vpop.permute.xlu0 %441 }
  0xeb   : > { %v460_v33 = vpop.permute.xlu1 %459 }
  0xee   : > { %v478_v37 = vpop.permute.xlu0 %477 }
  0xef   : > { %v496_v38 = vpop.permute.xlu1 %495 }
  0xf2   : > { %v514_v42 = vpop.permute.xlu0 %513 }
  0xf3   : > { %v532_v44 = vpop.permute.xlu1 %531 }
  0xf6   : > { %v550_v47 = vpop.permute.xlu0 %549 }
 0x14b   : > { %v340_v22 = vpop.f32.mrb[0].mxu0 }
 0x14c   : > { %v344_v24 = vadd.f32 %v340_v22, %v264_v20  ;;  %v768_v25 = vpop.f32.mrb[1].mxu0 }
 0x14e   : > { %346 = vst.msk [vmem:[#allocation2] sm:$0xff] %vm262_vm0, %v344_v24 }
 0x155   : > { %v350_v29 = vld [vmem:[#allocation2] sm:$0xff] }
 0x156   : > { %v358_v30 = vadd.f32 %v725_v28, %v350_v29  ;;  %v390_v32 = vadd.f32 %v388_v26, %v350_v29  ;;  %v372_v34 = vadd.f32 %v370_v21, %v350_v29  ;;  %v426_v35 = vadd.f32 %v424_v27, %v350_v29 }
 0x157   : > { %v408_v36 = vadd.f32 %v406_v23, %v350_v29  ;;  %v462_v39 = vadd.f32 %v460_v33, %v350_v29  ;;  %v444_v40 = vadd.f32 %v442_v31, %v350_v29  ;;  %v498_v41 = vadd.f32 %v496_v38, %v350_v29 }
 0x158   : > { %360 = vst.msk [vmem:[%s1302_s21] sm:$0xff] %vm359_vm3, %v358_v30  ;;  %392 = vrot.lane.b32.xlu0 %v390_v32, %s1061_s18  ;;  %374 = vrot.lane.b32.xlu1 %v372_v34, %s1062_s25  ;;  %v480_v43 = vadd.f32 %v478_v37, %v350_v29  ;;  %v534_v45 = vadd.f32 %v532_v44, %v350_v29 }
 0x159   : > { %v516_v46 = vadd.f32 %v514_v42, %v350_v29  ;;  %v552_v48 = vadd.f32 %v550_v47, %v350_v29 }
 0x15c   : > { %428 = vrot.lane.b32.xlu0 %v426_v35, %s1063_s27  ;;  %410 = vrot.lane.b32.xlu1 %v408_v36, %s1064_s22 }
 0x160   : > { %464 = vrot.lane.b32.xlu0 %v462_v39, %s1059_s30  ;;  %446 = vrot.lane.b32.xlu1 %v444_v40, %s1060_s6 }
 0x164   : > { %500 = vrot.lane.b32.xlu0 %v498_v41, %s1057_s29  ;;  %482 = vrot.lane.b32.xlu1 %v480_v43, %s1058_s4 }
 0x168   : > { %536 = vrot.lane.b32.xlu0 %v534_v45, %s1055_s9  ;;  %518 = vrot.lane.b32.xlu1 %v516_v46, %s1056_s10 }
 0x16c   : > { %554 = vrot.lane.b32.xlu1 %v552_v48, %s1054_s26 }
 0x1ca   : > { %v393_v49 = vpop.permute.xlu0 %392  ;;  %v375_v50 = vpop.permute.xlu1 %374 }
 0x1cb   : > { %729 = vst.msk [vmem:[%s1302_s21 + $0x10] sm:$0xff] %vm359_vm3, %v393_v49  ;;  %727 = vst.msk [vmem:[%s1302_s21 + $0x8] sm:$0xff] %vm359_vm3, %v375_v50 }
 0x1ce   : > { %v429_v51 = vpop.permute.xlu0 %428  ;;  %v411_v52 = vpop.permute.xlu1 %410 }
 0x1cf   : > { %733 = vst.msk [vmem:[%s1302_s21 + $0x20] sm:$0xff] %vm359_vm3, %v429_v51  ;;  %731 = vst.msk [vmem:[%s1302_s21 + $0x18] sm:$0xff] %vm359_vm3, %v411_v52 }
 0x1d2   : > { %v465_v53 = vpop.permute.xlu0 %464  ;;  %v447_v54 = vpop.permute.xlu1 %446 }
 0x1d3   : > { %737 = vst.msk [vmem:[%s1302_s21 + $0x30] sm:$0xff] %vm359_vm3, %v465_v53  ;;  %735 = vst.msk [vmem:[%s1302_s21 + $0x28] sm:$0xff] %vm359_vm3, %v447_v54 }
 0x1d6   : > { %v501_v55 = vpop.permute.xlu0 %500  ;;  %v483_v56 = vpop.permute.xlu1 %482 }
 0x1d7   : > { %741 = vst.msk [vmem:[%s1302_s21 + $0x40] sm:$0xff] %vm359_vm3, %v501_v55  ;;  %739 = vst.msk [vmem:[%s1302_s21 + $0x38] sm:$0xff] %vm359_vm3, %v483_v56 }
 0x1da   : > { %v537_v57 = vpop.permute.xlu0 %536  ;;  %v519_v58 = vpop.permute.xlu1 %518 }
 0x1db   : > { %745 = vst.msk [vmem:[%s1302_s21 + $0x50] sm:$0xff] %vm359_vm3, %v537_v57  ;;  %743 = vst.msk [vmem:[%s1302_s21 + $0x48] sm:$0xff] %vm359_vm3, %v519_v58 }
 0x1de   : > { %v555_v59 = vpop.permute.xlu1 %554 }
 0x1df   : > { %747 = vst.msk [vmem:[%s1302_s21 + $0x58] sm:$0xff] %vm359_vm3, %v555_v59 }
 0x1e0   : > { %s752_s24 = sshll.u32 %s1030_s15, 9  ;;  %s590_s8 = sshll.u32 %s1302_s21, 4  ;;  %s591_s8 = int_to_ptr.vmem [resolvable:$true] %s590_s8 }
 0x1e1   : > { %s573_s10 = scalar_lea.hbm %s1381_s3, %s752_s24  ;;  %s1065_s29 = smov 512  }
 0x1e2   : > { %p1396_p8 = scmp.ne.s32.totalorder %s1392_s28, 0  ;;  %s1066_s11 = smov 1024  }
 0x1e3   : > { %s1067_s4 = smov 4   ;;  %s1068_s30 = smov 128  }
 0x1e4   : > { %786 = sst [smem:[#allocation11]] (%p1396_p8), %s1065_s29  ;;  %s1069_s15 = smov 8  }
 0x1e5   : > { %787 = sst [smem:[#allocation11 + $0x1]] (%p1396_p8), %s1066_s11  ;;  %s1070_s6 = smov [#allocation10]  }
 0x1e6   : > { %788 = sst [smem:[#allocation11 + $0x2]] (%p1396_p8), %s1067_s4  ;;  %s1071_s7 = smov 0  }
 0x1e7   : > { %789 = sst [smem:[#allocation11 + $0x3]] (%p1396_p8), %s1068_s30 }
 0x1e8   : > { %790 = sst [smem:[#allocation11 + $0x4]] (%p1396_p8), %s1068_s30 }
 0x1e9   : > { %791 = sst [smem:[#allocation11 + $0x5]] (%p1396_p8), %s1069_s15 }
 0x1ea   : > { %792 = dma.general (%p1396_p8), %s591_s8, 1536, %s573_s10, %s560_s20, %s1070_s6, [#allocation11], %s1071_s7, 0  }
 0x1eb PF: > { %s618_s21 = sand.u32 1, %s1018_s12   ;;  %p1397_p12 = scmp.ne.s32.totalorder %s1389_s23, 0 }
 0x1ec   : > { %p1398_p1 = scmp.ge.s32.totalorder %s1038_s17, 2  ;;  %s619_s18 = scalar_lea.sflag [#allocation5], %s618_s21 }
 0x1ee   : > { %p806_p10 = pnand %p1398_p1, %p1397_p12 }
 0x1f0   : > { %1013 = dma.done.wait (!%p806_p10), %s619_s18, 1536  }
 0x1f1   : > { %1015 = vsyncadd (!%p806_p10), %s619_s18, 4294965760  ;;  %s20_s17 = sadd.s32 1, %s1038_s17   ;;  %s1399_s12 = smov %s1022_s13 }
 0x1f2   : > { %p17_p3 = scmp.ge.s32.totalorder %s20_s17, 4   ;;  %s1400_s13 = smov %s1026_s14 }
 0x1f3   : > { %s1401_s14 = smov %s1234_s5  ;;  %s1402_s15 = smov %s1034_s16 }
 0x1f4   : > { %s1403_s16 = smov %s1405_s19  ;;  %19 = sbr.rel (!%p17_p3) target bundleno = 7 (0x7), region = 121 }
 0x1fb   :  { %624 = vsyncpa [#allocation4], 1 }
 0x1fc   :  { %626 = vsyncpa [#allocation4 + $0x1], 1 }
 0x1fd   :  { %627 = vsyncpa [#allocation7], 1 }
 0x1fe   :  { %628 = vsyncpa [#allocation5], 1 }
 0x1ff   :  { %630 = vsyncpa [#allocation5 + $0x1], 1 }

</bundles_post_ra>
